<compile_context>
chip_gen: v5e
topology: v5e:2x2
jax: 0.10.0
libtpu: 0.0.40
codegen_flags: <defaults>
</compile_context>

<pallas_src>
import math

import jax
import jax.numpy as jnp
from jax.experimental import pallas as pl
from jax.experimental.pallas import tpu as pltpu


def _add_pe_kernel(x_ref, pe_ref, o_ref):
    # x_ref: (Bt, St, D); pe_ref: (St, D) broadcast over the batch rows.
    x = x_ref[...].astype(jnp.float32)
    pe = pe_ref[...].astype(jnp.float32)
    o_ref[...] = (x + pe[None, :, :]).astype(o_ref.dtype)
    # TODO(synk): training-mode dropout (random keep-mask via pltpu.prng_*) is
    # not implemented; inference semantics (identity dropout) are used.


def make_cosine_pe(d_model, max_len=512):
    """PE table identical to the PyTorch module's buffer.

    For even d_model the 0.1*randn init is fully overwritten by the sin/cos
    writes, so the buffer is deterministic."""
    position = jnp.arange(max_len, dtype=jnp.float32)[:, None]
    div_term = jnp.exp(
        jnp.arange(0, d_model, 2, dtype=jnp.float32)
        * (-(math.log(10000.0) / d_model)))
    ang = position * div_term                      # (max_len, d_model//2)
    pe = jnp.zeros((max_len, d_model), jnp.float32)
    pe = pe.at[:, 0::2].set(jnp.sin(ang))
    pe = pe.at[:, 1::2].set(jnp.cos(ang))
    return pe                                      # (max_len, d_model)


def _pick_tiles(B, S, D, itemsize, target_block_bytes):
    """Pick (Bt, St): St a multiple of 8 dividing S (or full S); x block ~2 MiB."""
    row_bytes = max(1, D * itemsize)
    target_rows = max(1, target_block_bytes // row_bytes)

    if S <= target_rows:
        St = S                                     # full extent (always legal)
    else:
        St = S                                     # fallback if no clean divisor
        cap = int(target_rows) - int(target_rows) % 8
        for cand in range(cap, 7, -8):
            if S % cand == 0:
                St = cand
                break

    bt_cap = max(1, int(target_rows // St))
    Bt = 1
    for cand in range(min(B, bt_cap), 0, -1):
        if B % cand == 0:
            Bt = cand
            break
    return Bt, St


def _xla_fallback(x, pe_s):
    return (x.astype(jnp.float32) + pe_s.astype(jnp.float32)[None]).astype(x.dtype)


def cosine_positional_embedding(x, pe, *, use_pallas=None,
                                target_block_bytes=2 << 20,
                                small_fallback_bytes=1 << 18):
    """x: (B, S, D), pe: (max_len, D)  ->  (B, S, D), same dtype as x."""
    B, S, D = x.shape
    itemsize = x.dtype.itemsize
    pe_s = pe[:S, :].astype(x.dtype)               # leading-dim slice: no relayout
    total_bytes = x.size * itemsize

    if use_pallas is None:
        use_pallas = total_bytes >= small_fallback_bytes
    if not use_pallas:
        # Tiny tensors: let XLA fuse the broadcast add into neighbors for free.
        return _xla_fallback(x, pe_s)

    Bt, St = _pick_tiles(B, S, D, itemsize, target_block_bytes)

    x_block_bytes = Bt * St * D * itemsize
    pe_block_bytes = St * D * itemsize
    if x_block_bytes > (16 << 20):
        # Awkward shape with no clean tiling -> don't risk VMEM pressure.
        return _xla_fallback(x, pe_s)

    # Double-buffered x + out blocks plus pe blocks plus headroom; never claim
    # all of v7x's 64 MiB VMEM (real need here is single-digit MiB).
    vmem_limit = 2 * (2 * x_block_bytes + pe_block_bytes) + (8 << 20)
    vmem_limit = int(min(max(vmem_limit, 16 << 20), 48 << 20))

    # Batch is the innermost grid axis: pe's block index is constant across
    # consecutive steps, so its VMEM block is reused instead of re-DMA'd.
    grid = (S // St, B // Bt)

    return pl.pallas_call(
        _add_pe_kernel,
        out_shape=jax.ShapeDtypeStruct((B, S, D), x.dtype),
        grid_spec=pltpu.PrefetchScalarGridSpec(
            num_scalar_prefetch=0,
            grid=grid,
            in_specs=[
                pl.BlockSpec((Bt, St, D), lambda si, bi: (bi, si, 0)),  # x
                pl.BlockSpec((St, D), lambda si, bi: (si, 0)),          # pe (batch-invariant)
            ],
            out_specs=pl.BlockSpec((Bt, St, D), lambda si, bi: (bi, si, 0)),
        ),
        compiler_params=pltpu.CompilerParams(
            dimension_semantics=("parallel", "arbitrary"),
            vmem_limit_bytes=vmem_limit,
        ),
    )(x, pe_s)


def reference(x, pe):
    """Pure-JAX mirror of the PyTorch forward (dropout = identity)."""
    S = x.shape[1]
    pe_s = pe[:S, :].astype(x.dtype)
    return (x.astype(jnp.float32) + pe_s.astype(jnp.float32)[None]).astype(x.dtype)


if __name__ == "__main__":
    max_len = 512
    key = jax.random.PRNGKey(0)
    k1, k2 = jax.random.split(key)

    # Small shape consistent with the module (batch=2, seq=8, hidden=32).
    # Force the Pallas path so the kernel is exercised even though the tensor
    # is below the XLA-fallback threshold.
    B, S, D = 2, 8, 32
    x_small = jax.random.normal(k1, (B, S, D), jnp.float32)
    pe_small = make_cosine_pe(D, max_len)
    out_small = jax.block_until_ready(
        cosine_positional_embedding(x_small, pe_small, use_pallas=True))
    ref_small = reference(x_small, pe_small)
    assert out_small.shape == (B, S, D)
    assert out_small.dtype == x_small.dtype
    assert jnp.allclose(out_small, ref_small, atol=1e-6, rtol=1e-6), (
        f"max err {float(jnp.max(jnp.abs(out_small - ref_small)))}")

    # Larger bf16 test: multi-step grid (pe block reused across the inner
    # batch axis), dtype preserved end-to-end.
    B2, S2, D2 = 64, 512, 256
    x_big = jax.random.normal(k2, (B2, S2, D2), jnp.float32).astype(jnp.bfloat16)
    pe_big = make_cosine_pe(D2, max_len)
    out_big = jax.block_until_ready(cosine_positional_embedding(x_big, pe_big))
    ref_big = reference(x_big, pe_big)
    assert out_big.shape == (B2, S2, D2)
    assert out_big.dtype == jnp.bfloat16
    assert jnp.allclose(out_big.astype(jnp.float32),
                        ref_big.astype(jnp.float32), atol=1e-2, rtol=1e-2)

    print("KERNEL_OK")
</pallas_src>

<mosaic_0001>
module attributes {stable_mosaic.version = 11 : i64} {
  func.func @_add_pe_kernel(%arg0: i32, %arg1: i32, %arg2: memref<2x8x32xf32, #tpu.memory_space<vmem>>, %arg3: memref<8x32xf32, #tpu.memory_space<vmem>>, %arg4: memref<2x8x32xf32, #tpu.memory_space<vmem>>) attributes {dimension_semantics = [#tpu.dimension_semantics<parallel>, #tpu.dimension_semantics<arbitrary>], iteration_bounds = array<i64: 1, 1>, scalar_prefetch = 0 : i64, scratch_operands = 0 : i64, tpu.core_type = #tpu.core_type<tc>, window_params = [{transform_indices = @transform_0, window_bounds = array<i64: 2, 8, 32>}, {transform_indices = @transform_1, window_bounds = array<i64: 8, 32>}, {transform_indices = @transform_2, window_bounds = array<i64: 2, 8, 32>}]} {
    %c0 = arith.constant 0 : index
    %c0_0 = arith.constant 0 : index
    %c0_1 = arith.constant 0 : index
    %0 = vector.load %arg2[%c0, %c0_0, %c0_1] : memref<2x8x32xf32, #tpu.memory_space<vmem>>, vector<2x8x32xf32>
    %c0_2 = arith.constant 0 : index
    %c0_3 = arith.constant 0 : index
    %1 = vector.load %arg3[%c0_2, %c0_3] : memref<8x32xf32, #tpu.memory_space<vmem>>, vector<8x32xf32>
    %2 = vector.shape_cast %1 : vector<8x32xf32> to vector<1x8x32xf32>
    %3 = vector.broadcast %2 : vector<1x8x32xf32> to vector<2x8x32xf32>
    %4 = arith.addf %0, %3 : vector<2x8x32xf32>
    %c0_4 = arith.constant 0 : index
    %c0_5 = arith.constant 0 : index
    %c0_6 = arith.constant 0 : index
    %5 = vector.load %arg4[%c0_4, %c0_5, %c0_6] : memref<2x8x32xf32, #tpu.memory_space<vmem>>, vector<2x8x32xf32>
    tpu.vector_store %arg4[%c0_4, %c0_5, %c0_6], %4 {strides = array<i32>} : memref<2x8x32xf32, #tpu.memory_space<vmem>>, vector<2x8x32xf32>,
    return
  }
  func.func @transform_0(%arg0: i32, %arg1: i32) -> (i32, i32, i32) {
    %c0_i32 = arith.constant 0 : i32
    %c0_i32_0 = arith.constant 0 : i32
    return %arg1, %arg0, %c0_i32 : i32, i32, i32
  }
  func.func @transform_1(%arg0: i32, %arg1: i32) -> (i32, i32) {
    %c0_i32 = arith.constant 0 : i32
    %c0_i32_0 = arith.constant 0 : i32
    return %arg0, %c0_i32 : i32, i32
  }
  func.func @transform_2(%arg0: i32, %arg1: i32) -> (i32, i32, i32) {
    %c0_i32 = arith.constant 0 : i32
    %c0_i32_0 = arith.constant 0 : i32
    return %arg1, %arg0, %c0_i32 : i32, i32, i32
  }
}

</mosaic_0001>

<bundles_post_ra>
// kernel: tpu_custom_call.1
= control target key start
LH: loop header
LB: loop body
LE: loop exit
PB: predicated region body
PF: predicated region fallthrough
CT: control target
= control target key end

     0   :  { %7 = vsyncpa [#allocation3], 0  ;;  %s182_s0 = inlined_call_operand.hbm [shape: f32[2,8,32], index: 0, kind: input, shape index: {}]   ;;  %s183_s1 = inlined_call_operand.hbm [shape: f32[8,32], index: 1, kind: input, shape index: {}]   ;;  %s184_s2 = inlined_call_operand.hbm [shape: f32[2,8,32], index: 2, kind: output, shape index: {}]  }
   0x1   :  { %8 = vsyncpa [#allocation6], 0 }
   0x2   :  { %9 = vsyncpa [#allocation4], 0  ;;  %s14_s11 = sshll.u32 %s182_s0, 4  ;;  %s153_s12 = smov [#allocation2]   ;;  %s15_s11 = int_to_ptr.hbm [resolvable:$true] %s14_s11 }
   0x3   :  { %s16_s13 = sshll.u32 %s153_s12, 4  ;;  %s28_s16 = sshll.u32 %s183_s1, 4  ;;  %s17_s13 = int_to_ptr.vmem [resolvable:$true] %s16_s13  ;;  %s29_s16 = int_to_ptr.hbm [resolvable:$true] %s28_s16 }
   0x4   :  { %s154_s17 = smov 128   ;;  %s155_s18 = smov 8  }
   0x5   :  { %22 = dma.hbm_to_vmem [thread:$0]  %s15_s11, 256, %s17_s13, [#allocation3], %s154_s17, %s154_s17, %s155_s18  }
   0x6   :  { %s156_s19 = smov [#allocation5]  }
   0x7   :  { %s30_s20 = sshll.u32 %s156_s19, 4  ;;  %s31_s20 = int_to_ptr.vmem [resolvable:$true] %s30_s20 }
   0x8   :  { %33 = dma.hbm_to_vmem [thread:$0]  %s29_s16, 128, %s31_s20, [#allocation6]  }
   0x9   :  { %147 = dma.done.wait [#allocation3], 256  }
   0xa   :  { %148 = vsyncadd [#allocation3], 4294967040 }
   0xb   :  { %149 = dma.done.wait [#allocation6], 128  }
   0xc   :  { %150 = vsyncadd [#allocation6], 4294967168  ;;  %s157_s0 = smov [#allocation7]   ;;  %s56_s24 = sshll.u32 %s184_s2, 4  ;;  %v42_v0 = vld [vmem:[#allocation2] sm:$0xff]  ;;  %v44_v1 = vld [vmem:[#allocation5] sm:$0xff]  ;;  %s57_s24 = int_to_ptr.hbm [resolvable:$true] %s56_s24 }
   0xd   :  { %s54_s21 = sshll.u32 %s157_s0, 4  ;;  %vm47_vm0 = vcmask 261120   ;;  %v43_v2 = vld [vmem:[#allocation2 + $0x8] sm:$0xff]  ;;  %v45_v3 = vadd.f32 %v44_v1, %v42_v0  ;;  %s55_s21 = int_to_ptr.vmem [resolvable:$true] %s54_s21 }
   0xe   :  { %v46_v4 = vadd.f32 %v44_v1, %v43_v2 }
   0xf   :  { %48 = vst.msk [vmem:[#allocation7] sm:$0xff] %vm47_vm0, %v45_v3 }
  0x10   :  { %49 = vst.msk [vmem:[#allocation7 + $0x8] sm:$0xff] %vm47_vm0, %v46_v4 }
  0x11   :  { %62 = dma.vmem_to_hbm [thread:$0]  %s55_s21, 256, %s57_s24, [#allocation4], %s154_s17, %s154_s17, %s155_s18  }
  0x12   :  { %151 = dma.done.wait [#allocation4], 256  }
  0x13   :  { %152 = vsyncadd [#allocation4], 4294967040 }
  0x14   :  { %67 = vsyncpa [#allocation3], 1 }
  0x15   :  { %68 = vsyncpa [#allocation6], 1 }
  0x16   :  { %69 = vsyncpa [#allocation4], 1 }

</bundles_post_ra>
